<compile_context>
chip_gen: v7x
topology: tpu7x:2x2x1
jax: 0.10.0
libtpu: 0.0.40
codegen_flags: <defaults>
</compile_context>

<pallas_src>
import jax
import jax.numpy as jnp
import numpy as np
from jax import lax
from jax.experimental import pallas as pl
from jax.experimental.pallas import tpu as pltpu


def _round_up(x, m):
    return ((x + m - 1) // m) * m


# ----------------------------------------------------------------------------
# Pallas kernel: streamed-over-time Elman RNN + final FC.
# ----------------------------------------------------------------------------
def rnn_clf_kernel(maxlen_ref,   # SMEM (1,)  i32   scalar prefetch: max(lengths)
                   len_ref,      # (Bp, 1)    i32   per-row lengths
                   x_ref,        # (T_BLK*Bp, E) bf16  time-major embedded block
                   wih_ref,      # (E, Hp)    bf16  W_ih^T (H-padded cols)
                   whh_ref,      # (Hp, Hp)   bf16  W_hh^T
                   b_ref,        # (1, Hp)    f32   b_ih + b_hh
                   wfc_ref,      # (Hp, Op)   bf16  W_fc^T
                   bfc_ref,      # (1, Op)    f32   b_fc
                   out_ref,      # (Bp, Op)   f32
                   h_scr,        # VMEM (Bp, Hp) f32  persistent hidden state
                   px_scr):      # VMEM (T_BLK*Bp, Hp) f32  block pre-activations
    bp = len_ref.shape[0]
    t_blk = x_ref.shape[0] // bp

    blk = pl.program_id(0)
    n_blk = pl.num_programs(0)

    @pl.when(blk == 0)
    def _init():
        h_scr[...] = jnp.zeros_like(h_scr)

    max_len = maxlen_ref[0]
    t0 = blk * t_blk

    @pl.when(t0 < max_len)
    def _block():
        # ---- Hoisted input projection: one MXU matmul per time block. ----
        px = jnp.dot(x_ref[...], wih_ref[...],
                     preferred_element_type=jnp.float32)      # (T_BLK*Bp, Hp) f32
        # bias broadcast done once per block (not per recurrent step)
        px_scr[...] = px + b_ref[...]

        lengths = len_ref[...]                                 # (Bp, 1) i32
        n_steps = jnp.minimum(max_len - t0, t_blk)             # skip padded tail

        def step(tt, h):
            row = pl.multiple_of(tt * bp, 8)
            pre_x = px_scr[pl.ds(row, bp), :]                  # (Bp, Hp) f32
            gate = pre_x + jnp.dot(h.astype(jnp.bfloat16), whh_ref[...],
                                   preferred_element_type=jnp.float32)
            h_new = jnp.tanh(gate)                             # f32 elementwise
            # packed-sequence semantics: freeze state once t >= lengths[b]
            return jnp.where((t0 + tt) < lengths, h_new, h)

        h_scr[...] = lax.fori_loop(0, n_steps, step, h_scr[...])

    @pl.when(blk == n_blk - 1)
    def _final():
        out_ref[...] = (jnp.dot(h_scr[...].astype(jnp.bfloat16), wfc_ref[...],
                                preferred_element_type=jnp.float32)
                        + bfc_ref[...])


# ----------------------------------------------------------------------------
# Wrapper: embedding gather (glue), padding/layout, pallas_call.
# ----------------------------------------------------------------------------
def rnn_model_forward(x_tokens, lengths, params, t_blk=None):
    """x_tokens: (B, T) int32 token ids;  lengths: (B,) int32 (sorted desc)."""
    emb = params["embedding"]          # (V, E), row 0 zeroed (padding_idx=0)
    w_ih = params["w_ih"]              # (H, E)
    w_hh = params["w_hh"]              # (H, H)
    b_ih = params["b_ih"]              # (H,)
    b_hh = params["b_hh"]              # (H,)
    w_fc = params["w_fc"]              # (O, H)
    b_fc = params["b_fc"]              # (O,)

    B, T = x_tokens.shape
    E = emb.shape[1]
    H = w_hh.shape[0]
    O = w_fc.shape[0]

    # Lane / sublane alignment (zero padding is numerically exact).
    Bp = _round_up(B, 8)
    Hp = _round_up(H, 128)
    Op = _round_up(O, 128)
    if t_blk is None:
        # Small block: 2 (double-buffer) * t_blk*Bp*E*2B plus resident weights
        # and (t_blk*Bp, Hp) scratch stays far below v7x's 32 MiB scoped VMEM.
        t_blk = min(T, 128)
    T_pad = _round_up(T, t_blk)
    num_blocks = T_pad // t_blk

    # Time-major token ids (pad token 0 -> zero embedding row).  No HBM
    # transpose of the big embedded tensor: gather directly in (T, B) order.
    # TODO(synk): embedding gather stays as XLA glue (data-dependent row gather).
    tok_tm = jnp.zeros((T_pad, Bp), jnp.int32)
    tok_tm = tok_tm.at[:T, :B].set(jnp.transpose(x_tokens).astype(jnp.int32))
    emb_bf16 = emb.astype(jnp.bfloat16)
    x_tm = jnp.take(emb_bf16, tok_tm, axis=0)          # (T_pad, Bp, E) bf16
    x_stream = x_tm.reshape(T_pad * Bp, E)             # time-major, row = t*Bp + b

    lengths_p = jnp.zeros((Bp, 1), jnp.int32).at[:B, 0].set(
        lengths.astype(jnp.int32))
    max_len = jnp.max(lengths_p).reshape(1).astype(jnp.int32)

    # Pre-transposed, lane-padded weights; bf16 MXU operands, f32 biases.
    wih_t = (jnp.zeros((E, Hp), jnp.float32).at[:, :H]
             .set(jnp.transpose(w_ih)).astype(jnp.bfloat16))
    whh_t = (jnp.zeros((Hp, Hp), jnp.float32).at[:H, :H]
             .set(jnp.transpose(w_hh)).astype(jnp.bfloat16))
    b_vec = jnp.zeros((1, Hp), jnp.float32).at[0, :H].set(b_ih + b_hh)
    wfc_t = (jnp.zeros((Hp, Op), jnp.float32).at[:H, :O]
             .set(jnp.transpose(w_fc)).astype(jnp.bfloat16))
    bfc_v = jnp.zeros((1, Op), jnp.float32).at[0, :O].set(b_fc)

    grid_spec = pltpu.PrefetchScalarGridSpec(
        num_scalar_prefetch=1,                 # max_len -> SMEM
        grid=(num_blocks,),
        in_specs=[
            pl.BlockSpec((Bp, 1), lambda t, ml: (0, 0)),            # lengths
            pl.BlockSpec((t_blk * Bp, E), lambda t, ml: (t, 0)),    # x (streamed)
            pl.BlockSpec((E, Hp), lambda t, ml: (0, 0)),            # W_ih^T
            pl.BlockSpec((Hp, Hp), lambda t, ml: (0, 0)),           # W_hh^T
            pl.BlockSpec((1, Hp), lambda t, ml: (0, 0)),            # bias
            pl.BlockSpec((Hp, Op), lambda t, ml: (0, 0)),           # W_fc^T
            pl.BlockSpec((1, Op), lambda t, ml: (0, 0)),            # b_fc
        ],
        out_specs=pl.BlockSpec((Bp, Op), lambda t, ml: (0, 0)),
        scratch_shapes=[
            pltpu.VMEM((Bp, Hp), jnp.float32),            # hidden state carry
            pltpu.VMEM((t_blk * Bp, Hp), jnp.float32),    # block pre-activations
        ],
    )

    out_pad = pl.pallas_call(
        rnn_clf_kernel,
        out_shape=jax.ShapeDtypeStruct((Bp, Op), jnp.float32),
        grid_spec=grid_spec,
        compiler_params=pltpu.CompilerParams(
            dimension_semantics=("arbitrary",)),   # time axis is sequential
    )(max_len, lengths_p, x_stream, wih_t, whh_t, b_vec, wfc_t, bfc_v)

    return out_pad[:B, :O]


# ----------------------------------------------------------------------------
# Pure-JAX reference (sanity check).  matmul_dtype=bf16 mirrors the kernel's
# operand rounding exactly; matmul_dtype=f32 is the "PyTorch-faithful" check.
# ----------------------------------------------------------------------------
def reference_forward(x_tokens, lengths, params, matmul_dtype=jnp.float32):
    emb = params["embedding"].astype(matmul_dtype)
    embedded = jnp.take(emb, x_tokens, axis=0)              # (B, T, E)
    B, T, _ = embedded.shape
    H = params["w_hh"].shape[0]
    w_ih_t = jnp.transpose(params["w_ih"]).astype(matmul_dtype)
    w_hh_t = jnp.transpose(params["w_hh"]).astype(matmul_dtype)
    w_fc_t = jnp.transpose(params["w_fc"]).astype(matmul_dtype)
    b = (params["b_ih"] + params["b_hh"]).astype(jnp.float32)
    h = jnp.zeros((B, H), jnp.float32)
    for t in range(T):
        gate = (jnp.dot(embedded[:, t, :], w_ih_t,
                        preferred_element_type=jnp.float32)
                + jnp.dot(h.astype(matmul_dtype), w_hh_t,
                          preferred_element_type=jnp.float32)
                + b)
        h_new = jnp.tanh(gate)
        h = jnp.where((t < lengths)[:, None], h_new, h)
    return (jnp.dot(h.astype(matmul_dtype), w_fc_t,
                    preferred_element_type=jnp.float32)
            + params["b_fc"].astype(jnp.float32))


# ----------------------------------------------------------------------------
# Deterministic parameter init (shapes match the PyTorch module's __init__).
# ----------------------------------------------------------------------------
def init_params(key, vocab_size, embedding_dim, hidden_dim, output_dim):
    ks = jax.random.split(key, 7)
    bound = 1.0 / np.sqrt(hidden_dim)

    embedding = jax.random.normal(ks[0], (vocab_size, embedding_dim),
                                  jnp.float32)
    embedding = embedding.at[0].set(0.0)  # padding_idx=0

    def unif(k, shape):
        return jax.random.uniform(k, shape, jnp.float32, -bound, bound)

    return {
        "embedding": embedding,
        "w_ih": unif(ks[1], (hidden_dim, embedding_dim)),   # nn.RNN weight_ih_l0
        "w_hh": unif(ks[2], (hidden_dim, hidden_dim)),      # nn.RNN weight_hh_l0
        "b_ih": unif(ks[3], (hidden_dim,)),
        "b_hh": unif(ks[4], (hidden_dim,)),
        "w_fc": unif(ks[5], (output_dim, hidden_dim)),
        "b_fc": unif(ks[6], (output_dim,)),
    }


if __name__ == "__main__":
    vocab_size, embedding_dim, hidden_dim, output_dim = 50, 16, 32, 4
    batch, seq_len = 2, 8

    key = jax.random.PRNGKey(0)
    kp, kx = jax.random.split(key)
    params = init_params(kp, vocab_size, embedding_dim, hidden_dim, output_dim)

    # Sorted-descending lengths (enforce_sorted=True), padding token id 0.
    lengths = jnp.array([8, 5], dtype=jnp.int32)
    x_tokens = jax.random.randint(kx, (batch, seq_len), 1, vocab_size,
                                  dtype=jnp.int32)
    t_idx = jnp.arange(seq_len)[None, :]
    x_tokens = jnp.where(t_idx < lengths[:, None], x_tokens, 0)

    out = jax.block_until_ready(rnn_model_forward(x_tokens, lengths, params))

    # Tight check vs a reference with the same bf16 operand rounding.
    ref_bf16 = reference_forward(x_tokens, lengths, params,
                                 matmul_dtype=jnp.bfloat16)
    np.testing.assert_allclose(np.asarray(out), np.asarray(ref_bf16),
                               rtol=2e-3, atol=2e-3)
    # Loose check vs the f32 (PyTorch-faithful) reference.
    ref_f32 = reference_forward(x_tokens, lengths, params,
                                matmul_dtype=jnp.float32)
    np.testing.assert_allclose(np.asarray(out), np.asarray(ref_f32),
                               rtol=3e-2, atol=3e-2)

    print("KERNEL_OK")
</pallas_src>

<mosaic_0001>
module attributes {stable_mosaic.version = 11 : i64} {
  func.func @rnn_clf_kernel(%arg0: i32, %arg1: memref<1xi32, #tpu.memory_space<smem>>, %arg2: memref<8x1xi32, #tpu.memory_space<vmem>>, %arg3: memref<64x16xbf16, #tpu.memory_space<vmem>>, %arg4: memref<16x128xbf16, #tpu.memory_space<vmem>>, %arg5: memref<128x128xbf16, #tpu.memory_space<vmem>>, %arg6: memref<1x128xf32, #tpu.memory_space<vmem>>, %arg7: memref<128x128xbf16, #tpu.memory_space<vmem>>, %arg8: memref<1x128xf32, #tpu.memory_space<vmem>>, %arg9: memref<8x128xf32, #tpu.memory_space<vmem>>, %arg10: memref<8x128xf32, #tpu.memory_space<vmem>>, %arg11: memref<64x128xf32, #tpu.memory_space<vmem>>) attributes {dimension_semantics = [#tpu.dimension_semantics<arbitrary>], iteration_bounds = array<i64: 1>, scalar_prefetch = 1 : i64, scratch_operands = 2 : i64, tpu.core_type = #tpu.core_type<tc>, window_params = [{pipeline_mode = #tpu.pipeline_mode<synchronous>, transform_indices = @transform_0, window_bounds = array<i64: 8, 1>}, {transform_indices = @transform_1, window_bounds = array<i64: 64, 16>}, {pipeline_mode = #tpu.pipeline_mode<synchronous>, transform_indices = @transform_2, window_bounds = array<i64: 16, 128>}, {pipeline_mode = #tpu.pipeline_mode<synchronous>, transform_indices = @transform_3, window_bounds = array<i64: 128, 128>}, {pipeline_mode = #tpu.pipeline_mode<synchronous>, transform_indices = @transform_4, window_bounds = array<i64: 1, 128>}, {pipeline_mode = #tpu.pipeline_mode<synchronous>, transform_indices = @transform_5, window_bounds = array<i64: 128, 128>}, {pipeline_mode = #tpu.pipeline_mode<synchronous>, transform_indices = @transform_6, window_bounds = array<i64: 1, 128>}, {pipeline_mode = #tpu.pipeline_mode<synchronous>, transform_indices = @transform_7, window_bounds = array<i64: 8, 128>}]} {
    %c0_i32 = arith.constant 0 : i32
    %0 = arith.cmpi eq, %arg0, %c0_i32 : i32
    %1 = arith.extui %0 : i1 to i32
    %c0_i32_0 = arith.constant 0 : i32
    %2 = arith.cmpi ne, %1, %c0_i32_0 : i32
    scf.if %2 {
      %cst = arith.constant 0.000000e+00 : f32
      %11 = vector.broadcast %cst : f32 to vector<8x128xf32>
      %c0_4 = arith.constant 0 : index
      %c0_5 = arith.constant 0 : index
      %12 = vector.load %arg10[%c0_4, %c0_5] : memref<8x128xf32, #tpu.memory_space<vmem>>, vector<8x128xf32>
      tpu.vector_store %arg10[%c0_4, %c0_5], %11 {strides = array<i32>} : memref<8x128xf32, #tpu.memory_space<vmem>>, vector<8x128xf32>,
    } else {
    }
    %c0 = arith.constant 0 : index
    %3 = memref.load %arg1[%c0] : memref<1xi32, #tpu.memory_space<smem>>
    %c8_i32 = arith.constant 8 : i32
    %4 = arith.muli %arg0, %c8_i32 : i32
    %5 = arith.cmpi slt, %4, %3 : i32
    %6 = arith.extui %5 : i1 to i32
    %c0_i32_1 = arith.constant 0 : i32
    %7 = arith.cmpi ne, %6, %c0_i32_1 : i32
    scf.if %7 {
      %c0_4 = arith.constant 0 : index
      %c0_5 = arith.constant 0 : index
      %11 = vector.load %arg3[%c0_4, %c0_5] : memref<64x16xbf16, #tpu.memory_space<vmem>>, vector<64x16xbf16>
      %c0_6 = arith.constant 0 : index
      %c0_7 = arith.constant 0 : index
      %12 = vector.load %arg4[%c0_6, %c0_7] : memref<16x128xbf16, #tpu.memory_space<vmem>>, vector<16x128xbf16>
      %cst = arith.constant dense<0.000000e+00> : vector<64x128xf32>
      %13 = tpu.matmul %11, %12, %cst {dimension_numbers = #tpu.dot_dimension_numbers<[1], [0], [0], [1], [0, 0, 1, 1], [], []>} : vector<64x16xbf16>, vector<16x128xbf16>, vector<64x128xf32> -> vector<64x128xf32>
      %c0_8 = arith.constant 0 : index
      %c0_9 = arith.constant 0 : index
      %14 = vector.load %arg6[%c0_8, %c0_9] : memref<1x128xf32, #tpu.memory_space<vmem>>, vector<1x128xf32>
      %15 = vector.broadcast %14 : vector<1x128xf32> to vector<64x128xf32>
      %16 = arith.addf %13, %15 : vector<64x128xf32>
      %c0_10 = arith.constant 0 : index
      %c0_11 = arith.constant 0 : index
      %17 = vector.load %arg11[%c0_10, %c0_11] : memref<64x128xf32, #tpu.memory_space<vmem>>, vector<64x128xf32>
      tpu.vector_store %arg11[%c0_10, %c0_11], %16 {strides = array<i32>} : memref<64x128xf32, #tpu.memory_space<vmem>>, vector<64x128xf32>,
      %c0_12 = arith.constant 0 : index
      %c0_13 = arith.constant 0 : index
      %18 = vector.load %arg2[%c0_12, %c0_13] : memref<8x1xi32, #tpu.memory_space<vmem>>, vector<8x1xi32>
      %19 = arith.subi %3, %4 : i32
      %c8_i32_14 = arith.constant 8 : i32
      %20 = arith.minsi %19, %c8_i32_14 : i32
      %c0_15 = arith.constant 0 : index
      %c0_16 = arith.constant 0 : index
      %21 = vector.load %arg10[%c0_15, %c0_16] : memref<8x128xf32, #tpu.memory_space<vmem>>, vector<8x128xf32>
      %c0_i32_17 = arith.constant 0 : i32
      %22 = arith.subi %20, %c0_i32_17 : i32
      %23 = arith.addi %c0_i32_17, %22 : i32
      %c1_i32 = arith.constant 1 : i32
      %24 = scf.for %arg12 = %c0_i32_17 to %23 step %c1_i32 iter_args(%arg13 = %21) -> (vector<8x128xf32>)  : i32 {
        %c8_i32_20 = arith.constant 8 : i32
        %26 = arith.muli %arg12, %c8_i32_20 : i32
        %27 = tpu.assume_multiple %26, 8 : i32
        %28 = arith.index_cast %27 : i32 to index
        %c0_21 = arith.constant 0 : index
        %29 = vector.load %arg11[%28, %c0_21] : memref<64x128xf32, #tpu.memory_space<vmem>>, vector<8x128xf32>
        %30 = arith.truncf %arg13 : vector<8x128xf32> to vector<8x128xbf16>
        %c0_22 = arith.constant 0 : index
        %c0_23 = arith.constant 0 : index
        %31 = vector.load %arg5[%c0_22, %c0_23] : memref<128x128xbf16, #tpu.memory_space<vmem>>, vector<128x128xbf16>
        %cst_24 = arith.constant dense<0.000000e+00> : vector<8x128xf32>
        %32 = tpu.matmul %30, %31, %cst_24 {dimension_numbers = #tpu.dot_dimension_numbers<[1], [0], [0], [1], [0, 0, 1, 1], [], []>} : vector<8x128xbf16>, vector<128x128xbf16>, vector<8x128xf32> -> vector<8x128xf32>
        %33 = arith.addf %29, %32 : vector<8x128xf32>
        %34 = math.tanh %33 : vector<8x128xf32>
        %35 = arith.addi %4, %arg12 : i32
        %36 = vector.broadcast %35 : i32 to vector<8x1xi32>
        %37 = arith.cmpi slt, %36, %18 : vector<8x1xi32>
        %38 = vector.shape_cast %37 : vector<8x1xi1> to vector<8x1xi1>
        %39 = vector.broadcast %38 : vector<8x1xi1> to vector<8x128xi1>
        %40 = arith.select %39, %34, %arg13 : vector<8x128xi1>, vector<8x128xf32>
        scf.yield %40 : vector<8x128xf32>
      }
      %c0_18 = arith.constant 0 : index
      %c0_19 = arith.constant 0 : index
      %25 = vector.load %arg10[%c0_18, %c0_19] : memref<8x128xf32, #tpu.memory_space<vmem>>, vector<8x128xf32>
      tpu.vector_store %arg10[%c0_18, %c0_19], %24 {strides = array<i32>} : memref<8x128xf32, #tpu.memory_space<vmem>>, vector<8x128xf32>,
    } else {
    }
    %c0_i32_2 = arith.constant 0 : i32
    %8 = arith.cmpi eq, %arg0, %c0_i32_2 : i32
    %9 = arith.extui %8 : i1 to i32
    %c0_i32_3 = arith.constant 0 : i32
    %10 = arith.cmpi ne, %9, %c0_i32_3 : i32
    scf.if %10 {
      %c0_4 = arith.constant 0 : index
      %c0_5 = arith.constant 0 : index
      %11 = vector.load %arg10[%c0_4, %c0_5] : memref<8x128xf32, #tpu.memory_space<vmem>>, vector<8x128xf32>
      %12 = arith.truncf %11 : vector<8x128xf32> to vector<8x128xbf16>
      %c0_6 = arith.constant 0 : index
      %c0_7 = arith.constant 0 : index
      %13 = vector.load %arg7[%c0_6, %c0_7] : memref<128x128xbf16, #tpu.memory_space<vmem>>, vector<128x128xbf16>
      %cst = arith.constant dense<0.000000e+00> : vector<8x128xf32>
      %14 = tpu.matmul %12, %13, %cst {dimension_numbers = #tpu.dot_dimension_numbers<[1], [0], [0], [1], [0, 0, 1, 1], [], []>} : vector<8x128xbf16>, vector<128x128xbf16>, vector<8x128xf32> -> vector<8x128xf32>
      %c0_8 = arith.constant 0 : index
      %c0_9 = arith.constant 0 : index
      %15 = vector.load %arg8[%c0_8, %c0_9] : memref<1x128xf32, #tpu.memory_space<vmem>>, vector<1x128xf32>
      %16 = vector.broadcast %15 : vector<1x128xf32> to vector<8x128xf32>
      %17 = arith.addf %14, %16 : vector<8x128xf32>
      %c0_10 = arith.constant 0 : index
      %c0_11 = arith.constant 0 : index
      %18 = vector.load %arg9[%c0_10, %c0_11] : memref<8x128xf32, #tpu.memory_space<vmem>>, vector<8x128xf32>
      tpu.vector_store %arg9[%c0_10, %c0_11], %17 {strides = array<i32>} : memref<8x128xf32, #tpu.memory_space<vmem>>, vector<8x128xf32>,
    } else {
    }
    return
  }
  func.func @transform_0(%arg0: i32, %arg1: memref<1xi32, #tpu.memory_space<smem>>) -> (i32, i32) {
    %c0_i32 = arith.constant 0 : i32
    %c0_i32_0 = arith.constant 0 : i32
    %c0_i32_1 = arith.constant 0 : i32
    return %c0_i32, %c0_i32_0 : i32, i32
  }
  func.func @transform_1(%arg0: i32, %arg1: memref<1xi32, #tpu.memory_space<smem>>) -> (i32, i32) {
    %c0_i32 = arith.constant 0 : i32
    %c0_i32_0 = arith.constant 0 : i32
    return %arg0, %c0_i32 : i32, i32
  }
  func.func @transform_2(%arg0: i32, %arg1: memref<1xi32, #tpu.memory_space<smem>>) -> (i32, i32) {
    %c0_i32 = arith.constant 0 : i32
    %c0_i32_0 = arith.constant 0 : i32
    %c0_i32_1 = arith.constant 0 : i32
    return %c0_i32, %c0_i32_0 : i32, i32
  }
  func.func @transform_3(%arg0: i32, %arg1: memref<1xi32, #tpu.memory_space<smem>>) -> (i32, i32) {
    %c0_i32 = arith.constant 0 : i32
    %c0_i32_0 = arith.constant 0 : i32
    %c0_i32_1 = arith.constant 0 : i32
    return %c0_i32, %c0_i32_0 : i32, i32
  }
  func.func @transform_4(%arg0: i32, %arg1: memref<1xi32, #tpu.memory_space<smem>>) -> (i32, i32) {
    %c0_i32 = arith.constant 0 : i32
    %c0_i32_0 = arith.constant 0 : i32
    %c0_i32_1 = arith.constant 0 : i32
    return %c0_i32, %c0_i32_0 : i32, i32
  }
  func.func @transform_5(%arg0: i32, %arg1: memref<1xi32, #tpu.memory_space<smem>>) -> (i32, i32) {
    %c0_i32 = arith.constant 0 : i32
    %c0_i32_0 = arith.constant 0 : i32
    %c0_i32_1 = arith.constant 0 : i32
    return %c0_i32, %c0_i32_0 : i32, i32
  }
  func.func @transform_6(%arg0: i32, %arg1: memref<1xi32, #tpu.memory_space<smem>>) -> (i32, i32) {
    %c0_i32 = arith.constant 0 : i32
    %c0_i32_0 = arith.constant 0 : i32
    %c0_i32_1 = arith.constant 0 : i32
    return %c0_i32, %c0_i32_0 : i32, i32
  }
  func.func @transform_7(%arg0: i32, %arg1: memref<1xi32, #tpu.memory_space<smem>>) -> (i32, i32) {
    %c0_i32 = arith.constant 0 : i32
    %c0_i32_0 = arith.constant 0 : i32
    %c0_i32_1 = arith.constant 0 : i32
    return %c0_i32, %c0_i32_0 : i32, i32
  }
}

</mosaic_0001>

<bundles_post_ra>
// kernel: tpu_custom_call.1
= control target key start
LH: loop header
LB: loop body
LE: loop exit
PB: predicated region body
PF: predicated region fallthrough
CT: control target
= control target key end

     0   :  { %14 = vsyncpa [#allocation7], 0  ;;  %s920_s0 = inlined_call_operand.<no memory space> [shape: s32[1], index: 0, kind: input, shape index: {}]   ;;  %s921_s1 = inlined_call_operand.vmem [shape: s32[8,1], index: 1, kind: input, shape index: {}]   ;;  %s922_s2 = inlined_call_operand.vmem [shape: bf16[64,16], index: 2, kind: input, shape index: {}]   ;;  %s923_s3 = inlined_call_operand.hbm [shape: bf16[16,128], index: 3, kind: input, shape index: {}]   ;;  %s924_s4 = inlined_call_operand.vmem [shape: bf16[128,128], index: 4, kind: input, shape index: {}]   ;;  %s925_s5 = inlined_call_operand.vmem [shape: f32[1,128], index: 5, kind: input, shape index: {}]   ;;  %s926_s6 = inlined_call_operand.hbm [shape: bf16[128,128], index: 6, kind: input, shape index: {}]   ;;  %s927_s7 = inlined_call_operand.vmem [shape: f32[1,128], index: 7, kind: input, shape index: {}]   ;;  %s928_s8 = inlined_call_operand.hbm [shape: f32[8,128], index: 8, kind: output, shape index: {}]  }
   0x1   :  { %15 = vsyncpa [#allocation10], 0 }
   0x2   :  { %16 = vsyncpa [#allocation8], 0  ;;  %s736_s27 = smov [#allocation6]   ;;  %s640_s9 = scalar_lea.hbm %s923_s3, 128 }
   0x3   :  { %s26_s28 = sshll.u32 %s736_s27, 4  ;;  %p641_p0 = scmp.ne.s32.totalorder %s923_s3, %s640_s9  ;;  %s27_s28 = int_to_ptr.vmem [resolvable:$true] %s26_s28 }
   0x4   :  { %p644_p1 = scmp.lt.u32.totalorder %s640_s9, %s923_s3 }
   0x6   :  { %p646_p2 = pnand %p644_p1, %p641_p0 }
   0x8   :  { %649 = shalt.err (!%p646_p2)
}
   0x9   :  { %s650_s14 = scalar_lea.vmem %s27_s28, 128  ;;  %p655_p4 = scmp.lt.s32.totalorder %s27_s28, %s27_s28 }
   0xa   :  { %p651_p3 = scmp.ne.s32.totalorder %s27_s28, %s650_s14  ;;  %p656_p5 = scmp.lt.s32.totalorder %s650_s14, %s650_s14 }
   0xc   :  { %p657_p6 = por %p656_p5, %p655_p4 }
   0xe   :  { %p658_p7 = pnand %p657_p6, %p651_p3 }
  0x10   :  { %661 = shalt.err (!%p658_p7)
}
  0x11   :  { %s737_s15 = smov 64   ;;  %s738_s16 = smov 4  }
  0x12   :  { %32 = dma.hbm_to_vmem [thread:$0]  %s923_s3, 128, %s27_s28, [#allocation7], %s737_s15, %s737_s15, %s738_s16  }
  0x13   :  { %s739_s19 = smov [#allocation9]   ;;  %s662_s23 = scalar_lea.hbm %s926_s6, 1024 }
  0x14   :  { %s42_s20 = sshll.u32 %s739_s19, 4  ;;  %p663_p8 = scmp.ne.s32.totalorder %s926_s6, %s662_s23  ;;  %s43_s20 = int_to_ptr.vmem [resolvable:$true] %s42_s20 }
  0x15   :  { %p666_p9 = scmp.lt.u32.totalorder %s662_s23, %s926_s6 }
  0x17   :  { %p668_p10 = pnand %p666_p9, %p663_p8 }
  0x19   :  { %671 = shalt.err (!%p668_p10)
}
  0x1a   :  { %s672_s29 = scalar_lea.vmem %s43_s20, 1024  ;;  %p677_p12 = scmp.lt.s32.totalorder %s43_s20, %s43_s20 }
  0x1b   :  { %p673_p11 = scmp.ne.s32.totalorder %s43_s20, %s672_s29  ;;  %p678_p13 = scmp.lt.s32.totalorder %s672_s29, %s672_s29 }
  0x1d   :  { %p679_p0 = por %p678_p13, %p677_p12 }
  0x1f   :  { %p680_p1 = pnand %p679_p0, %p673_p11 }
  0x21   :  { %683 = shalt.err (!%p680_p1)
}
  0x22   :  { %48 = dma.hbm_to_vmem [thread:$0]  %s926_s6, 1024, %s43_s20, [#allocation10], %s737_s15, %s737_s15, %s738_s16  }
  0x23   :  { %718 = dma.done.wait [#allocation7], 128  }
  0x24   :  { %719 = vsyncadd [#allocation7], 4294967168 }
  0x25   :  { %720 = dma.done.wait [#allocation10], 1024  }
  0x26   :  { %721 = vsyncadd [#allocation10], 4294966272  ;;  %v740_v0 = vmov 0.0   ;;  %p474_p2 = scmp.le.s32.totalorder %s920_s0, 0 }
  0x27   :  { %62 = vst [vmem:[#allocation2] sm:$0xff] %v740_v0  ;;  %v616_v1 = vld [vmem:[#allocation6] sm:$0xff] (!%p474_p2)   ;;  %v617_v2 = vld [vmem:[%s922_s2] sm:$0xff] (!%p474_p2)   ;;  %vm112_vm0 = vcmask (!%p474_p2), 130048   ;;  %v618_v3 = vld [vmem:[%s922_s2 + $0x10] sm:$0xff] (!%p474_p2)   ;;  %p200_p3 = scmp.lt.s32.totalorder (!%p474_p2), %s920_s0, 8 }
  0x28   :  { %68 = sbr.rel (%p474_p2) target bundleno = 523 (0x20b), region = 45  ;;  %530 = vmatprep.subr.bf16.mxu0 (!%p474_p2), %v616_v1  ;;  %580 = vmatprep.subr.bf16.mxu1 (!%p474_p2), %v616_v1  ;;  %v619_v4 = vld [vmem:[%s922_s2 + $0x8] sm:$0xff] (!%p474_p2)   ;;  %v620_v5 = vld [vmem:[%s922_s2 + $0x18] sm:$0xff] (!%p474_p2)   ;;  %v841_v6 = vld [vmem:[%s921_s1] sm:$0xff] (!%p474_p2) }
  0x29   :  { %531 = vmatpush3.bf16.msra.mxu0 (!%p474_p2), %v616_v1  ;;  %581 = vmatpush3.bf16.msra.mxu1 (!%p474_p2), %v616_v1  ;;  %v475_v8 = vld [vmem:[%s925_s5] ss:$0 sm:$0xff] (!%p474_p2) }
  0x2a   :  { %532 = vmatprep.mubr.msk.bf16.mxu0 (!%p474_p2), %vm112_vm0, %v617_v2  ;;  %536 = vmatprep.mubr.msk.bf16.mxu1 (!%p474_p2), %vm112_vm0, %v618_v3 }
  0x2c   :  { %533 = vmatmul.mubr.msk.bf16.vlgmr.msra.gmra.mrb[0].mxu0 (!%p474_p2), %vm112_vm0, %v619_v4  ;;  %537 = vmatmul.mubr.msk.bf16.vlgmr.msra.gmra.mrb[0].mxu1 (!%p474_p2), %vm112_vm0, %v620_v5 }
  0x2e   :  { %v202_v7 = vld [vmem:[#allocation2] sm:$0xff] (!%p474_p2)  }
  0x2f   :  { %s846_s25 = scalar_select %p200_p3, %s920_s0, 8  ;;  %v929_v25 = vmov %v202_v7 }
  0x30   :  { %v724_v26 = vmov (!%p474_p2), %v202_v7   ;;  %s857_s5 = smov (!%p474_p2), 0  }
  0xff   :  { %v534_v9 = vpop.f32.mrb[0].mxu0  ;;  %v538_v10 = vpop.f32.mrb[0].mxu1  ;;  %468 = sbr.rel (%p474_p2) target bundleno = 522 (0x20a), region = 70 }
 0x100   :  { %v168_v11 = vadd.f32 %v534_v9, %v475_v8  ;;  %v184_v12 = vadd.f32 %v538_v10, %v475_v8  ;;  %v159_v13 = vpop.f32.mrb[1].mxu0  ;;  %v175_v14 = vpop.f32.mrb[1].mxu1 }
 0x101   :  { %v160_v15 = vadd.f32 %v475_v8, %v159_v13  ;;  %v176_v16 = vadd.f32 %v475_v8, %v175_v14  ;;  %v535_v17 = vpop.f32.mrb[2].mxu0  ;;  %v539_v18 = vpop.f32.mrb[2].mxu1 }
 0x102   :  { %192 = vst [vmem:[#allocation3 + $0x10] sm:$0xff] %v168_v11  ;;  %196 = vst [vmem:[#allocation3 + $0x30] sm:$0xff] %v184_v12  ;;  %v171_v19 = vadd.f32 %v535_v17, %v475_v8  ;;  %v187_v20 = vadd.f32 %v539_v18, %v475_v8  ;;  %v162_v21 = vpop.f32.mrb[3].mxu0  ;;  %v178_v22 = vpop.f32.mrb[3].mxu1 }
 0x103   :  { %190 = vst [vmem:[#allocation3] sm:$0xff] %v160_v15  ;;  %194 = vst [vmem:[#allocation3 + $0x20] sm:$0xff] %v176_v16  ;;  %v163_v23 = vadd.f32 %v475_v8, %v162_v21  ;;  %v179_v24 = vadd.f32 %v475_v8, %v178_v22 }
 0x104   :  { %193 = vst [vmem:[#allocation3 + $0x18] sm:$0xff] %v171_v19  ;;  %197 = vst [vmem:[#allocation3 + $0x38] sm:$0xff] %v187_v20 }
 0x105   :  { %191 = vst [vmem:[#allocation3 + $0x8] sm:$0xff] %v163_v23  ;;  %195 = vst [vmem:[#allocation3 + $0x28] sm:$0xff] %v179_v24 }
 0x106 LB: > { %v622_v27 = vld [vmem:[%s924_s4] sm:$0xff]   ;;  %v741_v28 = vmov 0.0   ;;  %v623_v29 = vld [vmem:[%s924_s4 + $0x8] sm:$0xff]   ;;  %vm742_vm1 = vmmov 0   ;;  %v321_v30 = vstv %s730_s5  ;;  %v743_v31 = vmov 0   ;;  %v624_v33 = vld [vmem:[%s924_s4 + $0x10] sm:$0xff]   ;;  %s730_s5 = sphi %s857_s5, %s206_s5   ;;  %v726_v26 = vphi %v724_v26, %v725_v26  }
 0x107   : > { %540 = vmatprep.subr.bf16.mxu0 %v741_v28  ;;  %556 = vmatprep.mubr.msk.bf16.mxu0 %vm742_vm1, %v741_v28  ;;  %vm322_vm2 = vcmp.lt.s32.totalorder %v321_v30, %v841_v6  ;;  %v625_v34 = vld [vmem:[%s924_s4 + $0x18] sm:$0xff]   ;;  %v626_v35 = vld [vmem:[%s924_s4 + $0x20] sm:$0xff]   ;;  %v627_v36 = vld [vmem:[%s924_s4 + $0x28] sm:$0xff]   ;;  %v213_v39 = vpack.c.bf16 %v726_v26, %v726_v26  ;;  %s486_s19 = sshll.u32 %s730_s5, 3  ;;  %s206_s5 = sadd.s32 1, %s730_s5  }
 0x108   : > { %541 = vmatpush3.bf16.msra.mxu0 %v622_v27  ;;  %621 = vset.pattern.permute.xlu0 %v743_v31  ;;  %v323_v32 = vsel %vm322_vm2, 1, %v743_v31  ;;  %v628_v37 = vld [vmem:[%s924_s4 + $0x30] sm:$0xff]   ;;  %v629_v38 = vld [vmem:[%s924_s4 + $0x38] sm:$0xff]   ;;  %s211_s20 = scalar_lea.vmem [#allocation3], %s486_s19  ;;  %p205_p4 = scmp.ge.s32.totalorder %s206_s5, %s846_s25 }
 0x109   : > { %542 = vmatprep.subr.bf16.mxu0 %v741_v28  ;;  %325 = vperm.xlu0 %621, %v323_v32  }
 0x10c   : > { %543 = vmatpush3.bf16.msra.mxu0 %v623_v29  ;;  %v212_v40 = vld [vmem:[%s211_s20] sm:$0xff] }
 0x10d   : > { %544 = vmatprep.subr.bf16.mxu0 %v741_v28 }
 0x110   : > { %545 = vmatpush3.bf16.msra.mxu0 %v624_v33 }
 0x111   : > { %546 = vmatprep.subr.bf16.mxu0 %v741_v28 }
 0x114   : > { %547 = vmatpush3.bf16.msra.mxu0 %v625_v34 }
 0x115   : > { %548 = vmatprep.subr.bf16.mxu0 %v741_v28 }
 0x118   : > { %549 = vmatpush3.bf16.msra.mxu0 %v626_v35 }
 0x119   : > { %550 = vmatprep.subr.bf16.mxu0 %v741_v28 }
 0x11c   : > { %551 = vmatpush3.bf16.msra.mxu0 %v627_v36 }
 0x11d   : > { %552 = vmatprep.subr.bf16.mxu0 %v741_v28 }
 0x120   : > { %553 = vmatpush3.bf16.msra.mxu0 %v628_v37 }
 0x121   : > { %554 = vmatprep.subr.bf16.mxu0 %v741_v28 }
 0x124   : > { %555 = vmatpush3.bf16.msra.mxu0 %v629_v38 }
 0x127   : > { %557 = vmatmul.mubr.bf16.vlgmr.msra.gmra.mrb[0].mxu0 %v213_v39 }
 0x188   : > { %v326_v46 = vpop.permute.xlu0 %325 }
 0x189   : > { %vm327_vm3 = vcmp.eq.s32.totalorder %v326_v46, 1 }
 0x1fa   : > { %v312_v41 = vpop.f32.mrb[0].mxu0 }
 0x1fb   : > { %v318_v42 = vadd.f32 %v312_v41, %v212_v40  ;;  %v558_v43 = vpop.f32.mrb[1].mxu0 }
 0x1fc   : > { %v315_v44 = vpop.f32.mrb[2].mxu0 }
 0x1fd   : > { %630 = vtanh.f32 %v318_v42  ;;  %v559_v45 = vpop.f32.mrb[3].mxu0 }
 0x203   :  { %208 = sbr.rel (!%p205_p4) target bundleno = 262 (0x106), region = 76 }
 0x207   : > { %v631_v47 = vpop.eup %630 }
 0x208   : > { %v328_v48 = vsel %vm327_vm3, %v631_v47, %v726_v26  }
 0x209   : > { %v725_v26 = vmov %v328_v48   ;;  %v930_v25 = vmov (%p205_p4), %v328_v48 }
 0x20a PF:  { %329 = vst [vmem:[#allocation2] sm:$0xff] %v734_v25  ;;  %v734_v25 = vphi %v929_v25, %v930_v25  }
 0x20b PF:  { %560 = vmatprep.subr.bf16.mxu0 %v740_v0  ;;  %v632_v49 = vld [vmem:[#allocation9] sm:$0xff]   ;;  %vm744_vm4 = vmmov 0   ;;  %v633_v50 = vld [vmem:[#allocation9 + $0x8] sm:$0xff]   ;;  %v634_v51 = vld [vmem:[#allocation9 + $0x10] sm:$0xff]   ;;  %s745_s22 = smov [#allocation11]  }
 0x20c   :  { %576 = vmatprep.mubr.msk.bf16.mxu0 %vm744_vm4, %v740_v0  ;;  %561 = vmatpush3.bf16.msra.mxu0 %v632_v49  ;;  %v635_v52 = vld [vmem:[#allocation9 + $0x18] sm:$0xff]   ;;  %v636_v53 = vld [vmem:[#allocation9 + $0x20] sm:$0xff]   ;;  %v637_v54 = vld [vmem:[#allocation9 + $0x28] sm:$0xff]   ;;  %s453_s23 = sshll.u32 %s745_s22, 4  ;;  %s454_s23 = int_to_ptr.vmem [resolvable:$true] %s453_s23 }
 0x20d   :  { %562 = vmatprep.subr.bf16.mxu0 %v740_v0  ;;  %v638_v55 = vld [vmem:[#allocation9 + $0x30] sm:$0xff]   ;;  %v639_v56 = vld [vmem:[#allocation9 + $0x38] sm:$0xff]   ;;  %s684_s24 = scalar_lea.vmem %s454_s23, 128  ;;  %p689_p6 = scmp.lt.s32.totalorder %s454_s23, %s454_s23 }
 0x20e   :  { %v495_v59 = vld [vmem:[%s927_s7] ss:$0 sm:$0xff]  ;;  %p685_p5 = scmp.ne.s32.totalorder %s454_s23, %s684_s24  ;;  %p690_p7 = scmp.lt.s32.totalorder %s684_s24, %s684_s24 }
 0x210   :  { %563 = vmatpush3.bf16.msra.mxu0 %v633_v50  ;;  %p691_p8 = por %p690_p7, %p689_p6 }
 0x211   :  { %564 = vmatprep.subr.bf16.mxu0 %v740_v0  ;;  %v333_v57 = vld [vmem:[#allocation2] sm:$0xff] }
 0x212   :  { %v334_v58 = vpack.c.bf16 %v333_v57, %v333_v57  ;;  %p692_p9 = pnand %p691_p8, %p685_p5 }
 0x214   :  { %565 = vmatpush3.bf16.msra.mxu0 %v634_v51 }
 0x215   :  { %566 = vmatprep.subr.bf16.mxu0 %v740_v0 }
 0x218   :  { %567 = vmatpush3.bf16.msra.mxu0 %v635_v52 }
 0x219   :  { %568 = vmatprep.subr.bf16.mxu0 %v740_v0 }
 0x21c   :  { %569 = vmatpush3.bf16.msra.mxu0 %v636_v53 }
 0x21d   :  { %570 = vmatprep.subr.bf16.mxu0 %v740_v0 }
 0x220   :  { %571 = vmatpush3.bf16.msra.mxu0 %v637_v54 }
 0x221   :  { %572 = vmatprep.subr.bf16.mxu0 %v740_v0 }
 0x224   :  { %573 = vmatpush3.bf16.msra.mxu0 %v638_v55 }
 0x225   :  { %574 = vmatprep.subr.bf16.mxu0 %v740_v0 }
 0x228   :  { %575 = vmatpush3.bf16.msra.mxu0 %v639_v56 }
 0x22b   :  { %577 = vmatmul.mubr.bf16.vlgmr.msra.gmra.mrb[0].mxu0 %v334_v58 }
 0x2fe   :  { %v440_v60 = vpop.f32.mrb[0].mxu0 }
 0x2ff   :  { %v441_v61 = vadd.f32 %v495_v59, %v440_v60  ;;  %v578_v62 = vpop.f32.mrb[1].mxu0 }
 0x300   :  { %v443_v63 = vpop.f32.mrb[2].mxu0 }
 0x301   :  { %446 = vst [vmem:[#allocation11] sm:$0xff] %v441_v61  ;;  %v579_v1 = vpop.f32.mrb[3].mxu0 }
 0x302   :  { %695 = shalt.err (!%p692_p9)
}
 0x303   :  { %s696_s7 = scalar_lea.hbm %s928_s8, 128 }
 0x304   :  { %p697_p10 = scmp.ne.s32.totalorder %s928_s8, %s696_s7  ;;  %p700_p11 = scmp.lt.u32.totalorder %s696_s7, %s928_s8 }
 0x306   :  { %p702_p12 = pnand %p700_p11, %p697_p10 }
 0x308   :  { %705 = shalt.err (!%p702_p12)
}
 0x309   :  { %456 = dma.vmem_to_hbm [thread:$0]  %s454_s23, 128, %s928_s8, [#allocation8]  }
 0x30a   :  { %722 = dma.done.wait [#allocation8], 128  }
 0x30b   :  { %723 = vsyncadd [#allocation8], 4294967168 }
 0x30c   :  { %460 = vsyncpa [#allocation7], 1 }
 0x30d   :  { %461 = vsyncpa [#allocation10], 1 }
 0x30e   :  { %462 = vsyncpa [#allocation8], 1 }

</bundles_post_ra>
